<compile_context>
chip_gen: v7x
topology: tpu7x:2x2x1
jax: 0.10.0
libtpu: 0.0.40
codegen_flags: <defaults>
</compile_context>

<pallas_src>
import functools

import jax
import jax.numpy as jnp
from jax.experimental import pallas as pl
from jax.experimental.pallas import tpu as pltpu


# ----------------------------- Pallas kernel ------------------------------- #

def _stem_kernel(p_ref, w_ref, o_ref, carry_ref, *, pr, PW, Cout):
    """Fused conv(matmul)+BN+ReLU+maxpool3x3/s2 for `pr` pooled rows of one image."""
    t = pl.program_id(1)

    # New image: the pool row above pooled row 0 is padding (0 is a valid pad
    # value because everything downstream of the ReLU is >= 0).
    @pl.when(t == 0)
    def _():
        carry_ref[...] = jnp.zeros_like(carry_ref)

    # conv + BN (scale folded into w, bias folded in via the ones column) + ReLU
    acc = jnp.dot(p_ref[...], w_ref[...], preferred_element_type=jnp.float32)
    y = jnp.maximum(acc, 0.0)                            # (2*pr*2*PW, Cout)

    # ---- horizontal (kw) pool fold: conv cols {2*pw-1, 2*pw, 2*pw+1} ----
    y = y.reshape(2 * pr, 2, PW, Cout)                   # conv-row x col-parity x pw x C
    even = y[:, 0]                                       # conv col 2*pw
    odd = y[:, 1]                                        # conv col 2*pw+1
    odd_left = jnp.concatenate(                          # conv col 2*pw-1 (0 == pad)
        [jnp.zeros_like(odd[:, :1]), odd[:, :-1]], axis=1)
    h = jnp.maximum(jnp.maximum(even, odd), odd_left)    # (2*pr, PW, Cout)

    # ---- vertical (kh) pool fold: conv rows {2*ph-1, 2*ph, 2*ph+1} ----
    h = h.reshape(pr, 2, PW, Cout)                       # ph x row-parity x pw x C
    a = h[:, 0]                                          # conv row 2*ph
    b = h[:, 1]                                          # conv row 2*ph+1
    prev = carry_ref[...]                                # conv row 2*ph-1 of first ph in tile
    if pr > 1:
        b_up = jnp.concatenate([prev, b[:-1]], axis=0)   # conv row 2*ph-1
    else:
        b_up = prev
    out = jnp.maximum(jnp.maximum(a, b), b_up)           # (pr, PW, Cout)

    o_ref[...] = out.astype(o_ref.dtype)
    carry_ref[...] = b[pr - 1:pr]                        # last odd conv row -> next tile


# ------------------------------ JAX wrapper --------------------------------- #

def base_stem_forward(x_nchw, weight, gamma, beta, run_mean, run_var, eps=1e-5):
    N, Cin, H, W = x_nchw.shape
    Cout, Cin_w, KH, KW = weight.shape
    assert Cin == Cin_w and KH == 7 and KW == 7
    S, P = 2, 3
    OH = (H + 2 * P - KH) // S + 1
    OW = (W + 2 * P - KW) // S + 1
    # TODO(synk): only H % 4 == 0 and W % 8 == 0 are handled (even OH/OW, 8-aligned
    # patch tiles); other spatial sizes need extra edge handling.
    assert H % 4 == 0 and W % 8 == 0, (H, W)
    PH, PW = OH // 2, OW // 2
    M = N * OH * OW
    K = KH * KW * Cin
    K2 = K + 1                                           # +1 ones column carrying the BN bias

    # --- XLA glue: NCHW -> padded NHWC (bf16), im2col with output columns pre-split
    #     by parity.  Row order of `patches` is (n, conv_row, col_parity, pw).
    x = jnp.transpose(x_nchw, (0, 2, 3, 1)).astype(jnp.bfloat16)
    xp = jnp.pad(x, ((0, 0), (P, P), (P, P + 2), (0, 0)))   # +2 cols so slice stops stay in range

    def gather_phase(cp):
        cols = []
        for kh in range(KH):
            for kw in range(KW):
                c0 = 2 * cp + kw
                # element [n, oh, pw, c] = xp[n, 2*oh + kh, 4*pw + 2*cp + kw, c]
                cols.append(xp[:, kh:kh + 2 * OH:2, c0:c0 + 4 * PW:4, :])
        cols.append(jnp.ones((N, OH, PW, 1), jnp.bfloat16))  # bias (ones) column
        return jnp.concatenate(cols, axis=-1)                 # (N, OH, PW, K2)

    patches = jnp.stack([gather_phase(0), gather_phase(1)], axis=2)  # (N, OH, 2, PW, K2)
    patches = patches.reshape(M, K2)

    # --- frozen BN folded into the weight matrix (scale) and an extra bias row ---
    inv_std = 1.0 / jnp.sqrt(run_var.astype(jnp.float32) + eps)
    scale = gamma.astype(jnp.float32) * inv_std                       # (Cout,)
    bias = beta.astype(jnp.float32) - run_mean.astype(jnp.float32) * scale
    w_mat = jnp.transpose(weight, (2, 3, 1, 0)).reshape(K, Cout).astype(jnp.float32)
    w_mat = jnp.concatenate([w_mat * scale[None, :], bias[None, :]], axis=0)
    w_mat = w_mat.astype(jnp.bfloat16)                                # (K2, Cout)

    # --- tiling: pr pooled rows (= 2*pr conv rows = 2*pr*OW patch rows) per grid step;
    #     pr is an exact divisor of PH so there are no padded tail rows.
    TM_MAX = 2048
    cand = [d for d in range(1, PH + 1) if PH % d == 0 and 2 * d * OW <= TM_MAX]
    pr = max(cand) if cand else 1
    T = PH // pr
    tm = 2 * pr * OW                                     # patch rows per grid step (mult of 8)
    assert tm % 8 == 0

    kernel = functools.partial(_stem_kernel, pr=pr, PW=PW, Cout=Cout)

    cost = pl.CostEstimate(
        flops=2 * M * K2 * Cout + 8 * N * PH * PW * Cout,
        transcendentals=0,
        bytes_accessed=M * K2 * 2 + K2 * Cout * 2 + N * PH * PW * Cout * 4,
    )

    pooled = pl.pallas_call(
        kernel,
        out_shape=jax.ShapeDtypeStruct((N * PH, PW, Cout), jnp.float32),
        grid_spec=pltpu.PrefetchScalarGridSpec(
            num_scalar_prefetch=0,
            grid=(N, T),
            in_specs=[
                pl.BlockSpec((tm, K2), lambda n, t: (n * T + t, 0)),
                pl.BlockSpec((K2, Cout), lambda n, t: (0, 0)),
            ],
            out_specs=pl.BlockSpec((pr, PW, Cout), lambda n, t: (n * T + t, 0, 0)),
            scratch_shapes=[pltpu.VMEM((1, PW, Cout), jnp.float32)],
        ),
        compiler_params=pltpu.CompilerParams(
            dimension_semantics=("parallel", "arbitrary")),
        cost_estimate=cost,
    )(patches, w_mat)

    out = pooled.reshape(N, PH, PW, Cout)
    return jnp.transpose(out, (0, 3, 1, 2))              # back to NCHW


# ------------------------------ reference ----------------------------------- #

def reference_forward(x, weight, gamma, beta, mean, var, eps=1e-5):
    y = jax.lax.conv_general_dilated(
        x, weight, window_strides=(2, 2), padding=((3, 3), (3, 3)),
        dimension_numbers=("NCHW", "OIHW", "NCHW"))
    inv_std = 1.0 / jnp.sqrt(var + eps)
    scale = (gamma * inv_std).reshape(1, -1, 1, 1)
    bias = (beta - mean * gamma * inv_std).reshape(1, -1, 1, 1)
    y = jnp.maximum(y * scale + bias, 0.0)
    y = jax.lax.reduce_window(
        y, -jnp.inf, jax.lax.max,
        window_dimensions=(1, 1, 3, 3), window_strides=(1, 1, 2, 2),
        padding=((0, 0), (0, 0), (1, 1), (1, 1)))
    return y


# --------------------------------- main -------------------------------------- #

if __name__ == "__main__":
    N, Cin, H, W = 2, 3, 16, 16
    Cout = 32

    key = jax.random.PRNGKey(0)
    kx, kw_ = jax.random.split(key)
    x = jax.random.normal(kx, (N, Cin, H, W), dtype=jnp.float32)

    # deterministic synthetic parameters (Conv2d(3, Cout, 7, 2, 3, bias=False) + frozen BN)
    weight = 0.05 * jax.random.normal(kw_, (Cout, Cin, 7, 7), dtype=jnp.float32)
    gamma = 1.0 + 0.1 * jnp.arange(Cout, dtype=jnp.float32) / Cout
    beta = 0.02 * jnp.arange(Cout, dtype=jnp.float32)
    run_mean = 0.01 * jnp.arange(Cout, dtype=jnp.float32)
    run_var = 1.0 + 0.05 * jnp.arange(Cout, dtype=jnp.float32) / Cout

    fwd = jax.jit(base_stem_forward)
    out = jax.block_until_ready(fwd(x, weight, gamma, beta, run_mean, run_var))

    ref = jax.block_until_ready(
        reference_forward(x, weight, gamma, beta, run_mean, run_var))

    assert out.shape == (N, Cout, 4, 4), out.shape
    # bf16 MXU inputs (f32 accumulation) -> compare at bf16-appropriate tolerance
    assert jnp.allclose(out, ref, atol=2e-2, rtol=2e-2), float(jnp.max(jnp.abs(out - ref)))

    print("KERNEL_OK")
</pallas_src>

<mosaic_0001>
module attributes {stable_mosaic.version = 11 : i64} {
  func.func @_stem_kernel(%arg0: i32, %arg1: i32, %arg2: memref<64x148xbf16, #tpu.memory_space<vmem>>, %arg3: memref<148x32xbf16, #tpu.memory_space<vmem>>, %arg4: memref<4x4x32xf32, #tpu.memory_space<vmem>>, %arg5: memref<1x4x32xf32, #tpu.memory_space<vmem>>) attributes {dimension_semantics = [#tpu.dimension_semantics<parallel>, #tpu.dimension_semantics<arbitrary>], iteration_bounds = array<i64: 2, 1>, scalar_prefetch = 0 : i64, scratch_operands = 1 : i64, tpu.core_type = #tpu.core_type<tc>, window_params = [{transform_indices = @transform_0, window_bounds = array<i64: 64, 148>}, {pipeline_mode = #tpu.pipeline_mode<synchronous>, transform_indices = @transform_1, window_bounds = array<i64: 148, 32>}, {transform_indices = @transform_2, window_bounds = array<i64: 4, 4, 32>}]} {
    %c0_i32 = arith.constant 0 : i32
    %0 = arith.cmpi eq, %arg1, %c0_i32 : i32
    %1 = arith.extui %0 : i1 to i32
    %c0_i32_0 = arith.constant 0 : i32
    %2 = arith.cmpi ne, %1, %c0_i32_0 : i32
    scf.if %2 {
      %cst_15 = arith.constant 0.000000e+00 : f32
      %31 = vector.broadcast %cst_15 : f32 to vector<1x4x32xf32>
      %c0_16 = arith.constant 0 : index
      %c0_17 = arith.constant 0 : index
      %c0_18 = arith.constant 0 : index
      %32 = vector.load %arg5[%c0_16, %c0_17, %c0_18] : memref<1x4x32xf32, #tpu.memory_space<vmem>>, vector<1x4x32xf32>
      tpu.vector_store %arg5[%c0_16, %c0_17, %c0_18], %31 {strides = array<i32>} : memref<1x4x32xf32, #tpu.memory_space<vmem>>, vector<1x4x32xf32>,
    } else {
    }
    %c0 = arith.constant 0 : index
    %c0_1 = arith.constant 0 : index
    %3 = vector.load %arg2[%c0, %c0_1] : memref<64x148xbf16, #tpu.memory_space<vmem>>, vector<64x148xbf16>
    %c0_2 = arith.constant 0 : index
    %c0_3 = arith.constant 0 : index
    %4 = vector.load %arg3[%c0_2, %c0_3] : memref<148x32xbf16, #tpu.memory_space<vmem>>, vector<148x32xbf16>
    %cst = arith.constant dense<0.000000e+00> : vector<64x32xf32>
    %5 = tpu.matmul %3, %4, %cst {dimension_numbers = #tpu.dot_dimension_numbers<[1], [0], [0], [1], [0, 0, 1, 1], [], []>} : vector<64x148xbf16>, vector<148x32xbf16>, vector<64x32xf32> -> vector<64x32xf32>
    %cst_4 = arith.constant 0.000000e+00 : f32
    %6 = vector.broadcast %cst_4 : f32 to vector<64x32xf32>
    %7 = arith.maximumf %5, %6 : vector<64x32xf32>
    %8 = vector.shape_cast %7 : vector<64x32xf32> to vector<8x2x4x32xf32>
    %9 = vector.extract_strided_slice %8 {offsets = [0, 0, 0, 0], sizes = [8, 1, 4, 32], strides = [1, 1, 1, 1]} : vector<8x2x4x32xf32> to vector<8x1x4x32xf32>
    %10 = vector.shape_cast %9 : vector<8x1x4x32xf32> to vector<8x4x32xf32>
    %11 = vector.extract_strided_slice %8 {offsets = [0, 1, 0, 0], sizes = [8, 1, 4, 32], strides = [1, 1, 1, 1]} : vector<8x2x4x32xf32> to vector<8x1x4x32xf32>
    %12 = vector.shape_cast %11 : vector<8x1x4x32xf32> to vector<8x4x32xf32>
    %cst_5 = arith.constant 0.000000e+00 : f32
    %13 = vector.broadcast %cst_5 : f32 to vector<8x1x32xf32>
    %14 = vector.extract_strided_slice %12 {offsets = [0, 0, 0], sizes = [8, 3, 32], strides = [1, 1, 1]} : vector<8x4x32xf32> to vector<8x3x32xf32>
    %15 = tpu.concatenate %13, %14 in 1 : vector<8x1x32xf32>, vector<8x3x32xf32> -> vector<8x4x32xf32>
    %16 = arith.maximumf %10, %12 : vector<8x4x32xf32>
    %17 = arith.maximumf %16, %15 : vector<8x4x32xf32>
    %18 = vector.shape_cast %17 : vector<8x4x32xf32> to vector<4x2x4x32xf32>
    %19 = vector.extract_strided_slice %18 {offsets = [0, 0, 0, 0], sizes = [4, 1, 4, 32], strides = [1, 1, 1, 1]} : vector<4x2x4x32xf32> to vector<4x1x4x32xf32>
    %20 = vector.shape_cast %19 : vector<4x1x4x32xf32> to vector<4x4x32xf32>
    %21 = vector.extract_strided_slice %18 {offsets = [0, 1, 0, 0], sizes = [4, 1, 4, 32], strides = [1, 1, 1, 1]} : vector<4x2x4x32xf32> to vector<4x1x4x32xf32>
    %22 = vector.shape_cast %21 : vector<4x1x4x32xf32> to vector<4x4x32xf32>
    %c0_6 = arith.constant 0 : index
    %c0_7 = arith.constant 0 : index
    %c0_8 = arith.constant 0 : index
    %23 = vector.load %arg5[%c0_6, %c0_7, %c0_8] : memref<1x4x32xf32, #tpu.memory_space<vmem>>, vector<1x4x32xf32>
    %24 = vector.extract_strided_slice %22 {offsets = [0, 0, 0], sizes = [3, 4, 32], strides = [1, 1, 1]} : vector<4x4x32xf32> to vector<3x4x32xf32>
    %25 = tpu.concatenate %23, %24 in 0 : vector<1x4x32xf32>, vector<3x4x32xf32> -> vector<4x4x32xf32>
    %26 = arith.maximumf %20, %22 : vector<4x4x32xf32>
    %27 = arith.maximumf %26, %25 : vector<4x4x32xf32>
    %c0_9 = arith.constant 0 : index
    %c0_10 = arith.constant 0 : index
    %c0_11 = arith.constant 0 : index
    %28 = vector.load %arg4[%c0_9, %c0_10, %c0_11] : memref<4x4x32xf32, #tpu.memory_space<vmem>>, vector<4x4x32xf32>
    tpu.vector_store %arg4[%c0_9, %c0_10, %c0_11], %27 {strides = array<i32>} : memref<4x4x32xf32, #tpu.memory_space<vmem>>, vector<4x4x32xf32>,
    %29 = vector.extract_strided_slice %22 {offsets = [3, 0, 0], sizes = [1, 4, 32], strides = [1, 1, 1]} : vector<4x4x32xf32> to vector<1x4x32xf32>
    %c0_12 = arith.constant 0 : index
    %c0_13 = arith.constant 0 : index
    %c0_14 = arith.constant 0 : index
    %30 = vector.load %arg5[%c0_12, %c0_13, %c0_14] : memref<1x4x32xf32, #tpu.memory_space<vmem>>, vector<1x4x32xf32>
    tpu.vector_store %arg5[%c0_12, %c0_13, %c0_14], %29 {strides = array<i32>} : memref<1x4x32xf32, #tpu.memory_space<vmem>>, vector<1x4x32xf32>,
    return
  }
  func.func @transform_0(%arg0: i32, %arg1: i32) -> (i32, i32) {
    %c1_i32 = arith.constant 1 : i32
    %0 = arith.muli %arg0, %c1_i32 : i32
    %1 = arith.addi %0, %arg1 : i32
    %c0_i32 = arith.constant 0 : i32
    %c0_i32_0 = arith.constant 0 : i32
    return %1, %c0_i32 : i32, i32
  }
  func.func @transform_1(%arg0: i32, %arg1: i32) -> (i32, i32) {
    %c0_i32 = arith.constant 0 : i32
    %c0_i32_0 = arith.constant 0 : i32
    %c0_i32_1 = arith.constant 0 : i32
    return %c0_i32, %c0_i32_0 : i32, i32
  }
  func.func @transform_2(%arg0: i32, %arg1: i32) -> (i32, i32, i32) {
    %c1_i32 = arith.constant 1 : i32
    %0 = arith.muli %arg0, %c1_i32 : i32
    %1 = arith.addi %0, %arg1 : i32
    %c0_i32 = arith.constant 0 : i32
    %c0_i32_0 = arith.constant 0 : i32
    %c0_i32_1 = arith.constant 0 : i32
    return %1, %c0_i32, %c0_i32_0 : i32, i32, i32
  }
}

</mosaic_0001>

<bundles_post_ra>
// kernel: base_stem_forward.1
= control target key start
LH: loop header
LB: loop body
LE: loop exit
PB: predicated region body
PF: predicated region fallthrough
CT: control target
= control target key end

     0   :  { %7 = vsyncpa [#allocation4], 0  ;;  %s968_s0 = inlined_call_operand.vmem [shape: bf16[128,148], index: 0, kind: input, shape index: {}]   ;;  %s969_s1 = inlined_call_operand.vmem [shape: bf16[148,32], index: 1, kind: input, shape index: {}]   ;;  %s970_s2 = inlined_call_operand.hbm [shape: f32[8,4,32], index: 2, kind: output, shape index: {}]  }
   0x1   :  { %9 = vsyncpa [#allocation4 + $0x1], 0  ;;  %s792_s9 = smov 0   ;;  %s794_s10 = smov 0  }
   0x2   :  { %s796_s11 = smov 0   ;;  %s798_s12 = smov 0  }
   0x3   :  { %s800_s13 = smov 0   ;;  %s802_s14 = smov 0  }
   0x4 LB: > { %s553_s15 = sadd.s32 4294967295, %s770_s14   ;;  %s554_s16 = sadd.s32 4294967294, %s770_s14   ;;  %s770_s14 = sphi %s802_s14, %s15_s14   ;;  %s766_s13 = sphi %s800_s13, %s977_s13   ;;  %s762_s12 = sphi %s798_s12, %s976_s12   ;;  %s758_s11 = sphi %s796_s11, %s975_s11   ;;  %s754_s10 = sphi %s794_s10, %s974_s10   ;;  %s750_s9 = sphi %s792_s9, %s973_s9  }
   0x5   : > { %s27_s17 = sadd.s32 1, %s766_s13  ;;  %s85_s18 = sadd.s32 1, %s758_s11 }
   0x6   : > { %p29_p0 = scmp.ge.s32.totalorder %s27_s17, 2  ;;  %p95_p1 = scmp.ne.s32.totalorder %s758_s11, %s754_s10 }
   0x7   : > { %p96_p2 = scmp.eq.s32.totalorder %s553_s15, 1  ;;  %p101_p3 = scmp.ne.s32.totalorder %s754_s10, %s750_s9 }
   0x8   : > { %s979_s17 = smov (%p29_p0, %s27_s17), 0  ;;  %p102_p5 = scmp.eq.s32.totalorder %s554_s16, 1 }
   0x9   : > { %p832_p4 = por %p96_p2, %p95_p1  ;;  %s82_s20 = ssub.s32 %s766_s13, %s979_s17 }
   0xa   : > { %p557_p6 = scmp.ge.s32.totalorder %s770_s14, 1  ;;  %p83_p7 = scmp.eq.s32.totalorder %s82_s20, 0 }
   0xb   : > { %p839_p8 = por %p102_p5, %p101_p3  ;;  %p135_p9 = scmp.lt.s32.totalorder %s770_s14, 3 }
   0xc   : > { %s845_s22 = scalar_select %p83_p7, %s758_s11, %s85_s18  }
   0xd   : > { %p136_p10 = pnand %p557_p6, %p135_p9 }
   0xe   : > { %v670_v0 = vld [vmem:[%s969_s1] sm:$0xff] (!%p136_p10)   ;;  %v772_v1 = vmov (!%p136_p10), 0   ;;  %v671_v2 = vld [vmem:[%s969_s1 + $0x8] sm:$0xff] (!%p136_p10)   ;;  %s559_s27 = sshll.u32 (!%p136_p10), %s762_s12, 3  ;;  %v672_v3 = vld [vmem:[%s969_s1 + $0x10] sm:$0xff] (!%p136_p10)   ;;  %vm297_vm0 = vcmask (!%p136_p10), 162816  }
   0xf   : > { %139 = sbr.rel (%p136_p10) target bundleno = 306 (0x132), region = 28  ;;  %314 = vmatprep.subr.bf16.mxu0 (!%p136_p10), %v772_v1  ;;  %591 = vmatprep.subr.bf16.mxu1 (!%p136_p10), %v772_v1  ;;  %p161_p11 = scmp.lt.s32.totalorder (!%p136_p10), %s559_s27, 15  ;;  %v673_v4 = vld [vmem:[%s969_s1 + $0x18] sm:$0xff] (!%p136_p10)   ;;  %v674_v7 = vld [vmem:[%s969_s1 + $0x20] sm:$0xff] (!%p136_p10)   ;;  %v675_v8 = vld [vmem:[%s969_s1 + $0x28] sm:$0xff] (!%p136_p10)   ;;  %vm310_vm1 = vcmask (!%p136_p10), 1041408  }
  0x10   : > { %315 = vmatpush1.bf16.msra.mxu0 (!%p136_p10), %v670_v0  ;;  %601 = vmatpush1.bf16.msra.mxu1 (!%p136_p10), %v670_v0  ;;  %v676_v9 = vld [vmem:[%s969_s1 + $0x30] sm:$0xff] (!%p136_p10)   ;;  %v677_v10 = vld [vmem:[%s969_s1 + $0x38] sm:$0xff] (!%p136_p10)   ;;  %v678_v11 = vld [vmem:[%s969_s1 + $0x40] sm:$0xff] (!%p136_p10)   ;;  %vm175_vm2 = vcmask (!%p136_p10), 257024   ;;  %v773_v20 = vmov (!%p136_p10), 0.0   ;;  %vm427_vm3 = vcmask (!%p136_p10), 1040384  }
  0x11   : > { %316 = vmatprep.subr.bf16.mxu0 (!%p136_p10), %v772_v1  ;;  %592 = vmatprep.subr.bf16.mxu1 (!%p136_p10), %v772_v1  ;;  %v679_v12 = vld [vmem:[%s969_s1 + $0x48] ss:$0 sps:$4 sm:$0x33] (!%p136_p10)   ;;  %176 = vst.msk [vmem:[#allocation2] sm:$0xf] (!%p136_p10), %vm175_vm2, %v773_v20  ;;  %s774_s18 = smov (!%p136_p10), [#allocation3]  }
  0x12   : > { %v312_v13 = vsel (!%p136_p10), %vm310_vm1, %v679_v12, 0  ;;  %s696_s20 = sshll.u32 (!%p136_p10), %s774_s18, 4  ;;  %s697_s20 = int_to_ptr.vmem [resolvable:$false] %s696_s20 }
  0x13   : > { %s698_s23 = scalar_lea.vmem (!%p136_p10), %s697_s20, 512 }
  0x14   : > { %317 = vmatpush1.bf16.msra.mxu0 (!%p136_p10), %v671_v2  ;;  %602 = vmatpush1.bf16.msra.mxu1 (!%p136_p10), %v671_v2 }
  0x15   : > { %318 = vmatprep.subr.bf16.mxu0 (!%p136_p10), %v772_v1  ;;  %593 = vmatprep.subr.bf16.mxu1 (!%p136_p10), %v772_v1 }
  0x16   : > { %s981_s27 = smov (!%p161_p11, %s559_s27), 15 }
  0x17   : > { %s589_s30 = sshll.u32 %s981_s27, 3 }
  0x18   : > { %s860_s5 = scalar_lea.vmem %s968_s0, %s589_s30  ;;  %319 = vmatpush1.bf16.msra.mxu0 %v672_v3  ;;  %603 = vmatpush1.bf16.msra.mxu1 %v672_v3  ;;  %s156_s30 = sand.u32 1, %s754_s10   ;;  %v452_v0 = vld [vmem:[#allocation2] sm:$0xf] }
  0x19   : > { %v682_v5 = vld [vmem:[%s860_s5 + $0x4] ss:$8 sps:$4 sm:$0xff]   ;;  %320 = vmatprep.subr.bf16.mxu0 %v772_v1  ;;  %594 = vmatprep.subr.bf16.mxu1 %v772_v1  ;;  %v680_v14 = vld [vmem:[%s860_s5] ss:$8 sps:$4 sm:$0xff]   ;;  %v686_v16 = vld [vmem:[%s860_s5 + $0x14] ss:$8 sps:$4 sm:$0xff]  }
  0x1a   : > { %580 = vmatprep.mubr.msk.bf16.mxu0 %vm297_vm0, %v682_v5  ;;  %v685_v6 = vld [vmem:[%s860_s5 + $0x24] ss:$8 sps:$4 sm:$0xff]   ;;  %v683_v15 = vld [vmem:[%s860_s5 + $0x20] ss:$8 sps:$4 sm:$0xff]   ;;  %v688_v17 = vld [vmem:[%s860_s5 + $0x34] ss:$8 sps:$4 sm:$0xff]  }
  0x1b   : > { %582 = vmatprep.mubr.msk.bf16.mxu1 %vm297_vm0, %v685_v6  ;;  %v690_v18 = vld [vmem:[%s860_s5 + $0x10] ss:$8 sps:$4 sm:$0xff]   ;;  %s558_s3 = sshll.u32 %s156_s30, 4 }
  0x1c   : > { %321 = vmatpush1.bf16.msra.mxu0 %v673_v4  ;;  %604 = vmatpush1.bf16.msra.mxu1 %v673_v4  ;;  %v691_v19 = vld [vmem:[%s860_s5 + $0x30] ss:$8 sps:$4 sm:$0xff]   ;;  %s158_s4 = scalar_lea.vmem [#allocation3], %s558_s3  ;;  %s590_s5 = sshll.u32 %s762_s12, 8 }
  0x1d   : > { %322 = vmatprep.subr.bf16.mxu0 %v772_v1  ;;  %595 = vmatprep.subr.bf16.mxu1 %v772_v1  ;;  %s482_s6 = sshll.u32 %s158_s4, 4  ;;  %s914_s15 = scalar_lea.hbm %s970_s2, %s590_s5  ;;  %s916_s6 = int_to_ptr.vmem [resolvable:$true] %s482_s6 }
  0x1e   : > { %s922_s12 = scalar_lea.sflag [#allocation4], %s156_s30  ;;  %s692_s16 = scalar_lea.vmem %s916_s6, 256 }
  0x1f   : > { %p693_p12 = scmp.ne.s32.totalorder %s916_s6, %s692_s16  ;;  %p699_p1 = scmp.lt.s32.totalorder %s916_s6, %s697_s20 }
  0x20   : > { %323 = vmatpush1.bf16.msra.mxu0 %v674_v7  ;;  %605 = vmatpush1.bf16.msra.mxu1 %v674_v7  ;;  %p700_p2 = scmp.lt.s32.totalorder %s698_s23, %s692_s16 }
  0x21   : > { %324 = vmatprep.subr.bf16.mxu0 %v772_v1  ;;  %596 = vmatprep.subr.bf16.mxu1 %v772_v1  ;;  %p694_p13 = pnand %p693_p12, %p832_p4 }
  0x22   : > { %p701_p3 = por %p700_p2, %p699_p1 }
  0x23   : > { %p695_p0 = pneg %p694_p13 }
  0x24   : > { %325 = vmatpush1.bf16.msra.mxu0 %v675_v8  ;;  %606 = vmatpush1.bf16.msra.mxu1 %v675_v8 }
  0x25   : > { %326 = vmatprep.subr.bf16.mxu0 %v772_v1  ;;  %597 = vmatprep.subr.bf16.mxu1 %v772_v1  ;;  %p702_p5 = pnand %p701_p3, %p695_p0 }
  0x28   : > { %327 = vmatpush1.bf16.msra.mxu0 %v676_v9  ;;  %607 = vmatpush1.bf16.msra.mxu1 %v676_v9 }
  0x29   : > { %328 = vmatprep.subr.bf16.mxu0 %v772_v1  ;;  %598 = vmatprep.subr.bf16.mxu1 %v772_v1 }
  0x2c   : > { %329 = vmatpush1.bf16.msra.mxu0 %v677_v10  ;;  %608 = vmatpush1.bf16.msra.mxu1 %v677_v10 }
  0x2d   : > { %330 = vmatprep.subr.bf16.mxu0 %v772_v1  ;;  %599 = vmatprep.subr.bf16.mxu1 %v772_v1 }
  0x30   : > { %331 = vmatpush1.bf16.msra.mxu0 %v678_v11  ;;  %609 = vmatpush1.bf16.msra.mxu1 %v678_v11 }
  0x31   : > { %332 = vmatprep.subr.bf16.mxu0 %v772_v1  ;;  %600 = vmatprep.subr.bf16.mxu1 %v772_v1 }
  0x34   : > { %333 = vmatpush1.bf16.msra.mxu0 %v312_v13  ;;  %610 = vmatpush1.bf16.msra.mxu1 %v312_v13 }
  0x37   : > { %347 = vmatmul.mubr.bf16.vlgmr.msra.gmra.mrb[0].mxu0 %v680_v14  ;;  %363 = vmatmul.mubr.bf16.vlgmr.msra.gmra.mrb[0].mxu1 %v683_v15 }
  0x38   : > { %581 = vmatprep.mubr.msk.bf16.mxu0 %vm297_vm0, %v686_v16  ;;  %583 = vmatprep.mubr.msk.bf16.mxu1 %vm297_vm0, %v688_v17 }
  0x3f   : > { %355 = vmatmul.mubr.bf16.gmra.mrb[4].mxu0 %v690_v18  ;;  %371 = vmatmul.mubr.bf16.gmra.mrb[4].mxu1 %v691_v19 }
 0x10a   : > { %v348_v21 = vpop.f32.mrb[0].mxu0  ;;  %v364_v22 = vpop.f32.mrb[0].mxu1 }
 0x10b   : > { %v379_v23 = vmax.f32 %v348_v21, 0.0  ;;  %v383_v24 = vmax.f32 %v364_v22, 0.0  ;;  %v350_v25 = vpop.f32.mrb[1].mxu0  ;;  %v366_v26 = vpop.f32.mrb[1].mxu1 }
 0x10c   : > { %v351_v27 = vpop.f32.mrb[2].mxu0  ;;  %v367_v28 = vpop.f32.mrb[2].mxu1 }
 0x10d   : > { %v395_v29 = vcombine.high %v379_v23, %v379_v23  ;;  %v399_v30 = vcombine.high %v383_v24, %v383_v24  ;;  %v380_v31 = vmax.f32 %v351_v27, 0.0  ;;  %v384_v32 = vmax.f32 %v367_v28, 0.0  ;;  %v353_v33 = vpop.f32.mrb[3].mxu0  ;;  %v369_v34 = vpop.f32.mrb[3].mxu1 }
 0x10f   : > { %v411_v35 = vrot.slane %v395_v29, 7  ;;  %v415_v36 = vrot.slane %v399_v30, 7  ;;  %v436_v37 = vmax.f32 %v379_v23, %v395_v29  ;;  %v396_v38 = vcombine.high %v380_v31, %v380_v31 }
 0x110   : > { %v400_v39 = vcombine.high %v384_v32, %v384_v32  ;;  %v440_v42 = vmax.f32 %v383_v24, %v399_v30 }
 0x111   : > { %v428_v40 = vsel %vm427_vm3, 0.0, %v411_v35  ;;  %v432_v41 = vsel %vm427_vm3, 0.0, %v415_v36  ;;  %v412_v43 = vrot.slane %v396_v38, 7  ;;  %v437_v44 = vmax.f32 %v380_v31, %v396_v38 }
 0x112   : > { %v356_v45 = vpop.f32.mrb[4].mxu0  ;;  %v372_v46 = vpop.f32.mrb[4].mxu1  ;;  %v416_v47 = vrot.slane %v400_v39, 7  ;;  %v441_v48 = vmax.f32 %v384_v32, %v400_v39  ;;  %v444_v53 = vmax.f32 %v436_v37, %v428_v40  ;;  %v448_v63 = vmax.f32 %v440_v42, %v432_v41 }
 0x113   : > { %v381_v49 = vmax.f32 %v356_v45, 0.0  ;;  %v385_v50 = vmax.f32 %v372_v46, 0.0  ;;  %v358_v51 = vpop.f32.mrb[5].mxu0  ;;  %v374_v52 = vpop.f32.mrb[5].mxu1  ;;  %v429_v54 = vsel %vm427_vm3, 0.0, %v412_v43 }
 0x114   : > { %v359_v55 = vpop.f32.mrb[6].mxu0  ;;  %v375_v56 = vpop.f32.mrb[6].mxu1  ;;  %v445_v57 = vmax.f32 %v437_v44, %v429_v54  ;;  %v433_v58 = vsel %vm427_vm3, 0.0, %v416_v47 }
 0x115   : > { %v397_v59 = vcombine.high %v381_v49, %v381_v49  ;;  %v401_v60 = vcombine.high %v385_v50, %v385_v50  ;;  %v361_v61 = vpop.f32.mrb[7].mxu0  ;;  %v377_v62 = vpop.f32.mrb[7].mxu1  ;;  %v449_v1 = vmax.f32 %v441_v48, %v433_v58  ;;  %v382_v2 = vmax.f32 %v359_v55, 0.0 }
 0x116   : > { %v386_v3 = vmax.f32 %v375_v56, 0.0  ;;  %v453_v4 = vmax.f32 %v444_v53, %v445_v57 }
 0x117   : > { %v413_v5 = vrot.slane %v397_v59, 7  ;;  %v417_v6 = vrot.slane %v401_v60, 7  ;;  %v455_v7 = vmax.f32 %v448_v63, %v449_v1  ;;  %v398_v8 = vcombine.high %v382_v2, %v382_v2 }
 0x118   : > { %v402_v9 = vcombine.high %v386_v3, %v386_v3  ;;  %v457_v10 = vmax.f32 %v453_v4, %v452_v0  ;;  %v438_v11 = vmax.f32 %v381_v49, %v397_v59  ;;  %v442_v13 = vmax.f32 %v385_v50, %v401_v60 }
 0x119   : > { %v430_v12 = vsel %vm427_vm3, 0.0, %v413_v5  ;;  %v414_v14 = vrot.slane %v398_v8, 7  ;;  %v439_v15 = vmax.f32 %v382_v2, %v398_v8  ;;  %v434_v16 = vsel %vm427_vm3, 0.0, %v417_v6 }
 0x11a   : > { %462 = vst.msk [vmem:[%s158_s4] sm:$0xf] %vm175_vm2, %v457_v10  ;;  %v418_v17 = vrot.slane %v402_v9, 7  ;;  %v443_v18 = vmax.f32 %v386_v3, %v402_v9  ;;  %v446_v20 = vmax.f32 %v438_v11, %v430_v12  ;;  %v450_v23 = vmax.f32 %v442_v13, %v434_v16 }
 0x11b   : > { %v431_v19 = vsel %vm427_vm3, 0.0, %v414_v14 }
 0x11c   : > { %v447_v21 = vmax.f32 %v439_v15, %v431_v19  ;;  %v435_v22 = vsel %vm427_vm3, 0.0, %v418_v17 }
 0x11d   : > { %v451_v24 = vmax.f32 %v443_v18, %v435_v22 }
 0x11e   : > { %v454_v25 = vmax.f32 %v446_v20, %v447_v21  ;;  %v459_v26 = vmax.f32 %v455_v7, %v447_v21 }
 0x11f   : > { %v456_v27 = vmax.f32 %v450_v23, %v451_v24  ;;  %466 = vst.msk [vmem:[#allocation2] sm:$0xf] %vm175_vm2, %v451_v24 }
 0x120   : > { %v458_v28 = vmax.f32 %v454_v25, %v445_v57  ;;  %464 = vst.msk [vmem:[%s158_s4 + $0x8] sm:$0xf] %vm175_vm2, %v459_v26 }
 0x121   : > { %v460_v29 = vmax.f32 %v456_v27, %v449_v1 }
 0x122   : > { %463 = vst.msk [vmem:[%s158_s4 + $0x4] sm:$0xf] %vm175_vm2, %v458_v28 }
 0x123   : > { %465 = vst.msk [vmem:[%s158_s4 + $0xc] sm:$0xf] %vm175_vm2, %v460_v29 }
 0x124   : > { %705 = shalt.err (!%p702_p5)
}
 0x125   : > { %s706_s24 = scalar_lea.hbm %s914_s15, 256  ;;  %s710_s27 = scalar_lea.hbm %s970_s2, 512 }
 0x126   : > { %p707_p6 = scmp.ne.s32.totalorder %s914_s15, %s706_s24  ;;  %p711_p10 = scmp.lt.u32.totalorder %s914_s15, %s970_s2 }
 0x127   : > { %p712_p11 = scmp.lt.u32.totalorder %s710_s27, %s706_s24  ;;  %p714_p13 = scmp.lt.u32.totalorder %s706_s24, %s914_s15 }
 0x128   : > { %p708_p7 = pnand %p707_p6, %p832_p4 }
 0x129   : > { %p713_p12 = por %p712_p11, %p711_p10 }
 0x12a   : > { %p709_p9 = pneg %p708_p7 }
 0x12b   : > { %p715_p0 = por %p714_p13, %p713_p12 }
 0x12d   : > { %p716_p1 = pnand %p715_p0, %p709_p9 }
 0x12f   : > { %719 = shalt.err (!%p716_p1)
}
 0x130   : > { %s775_s30 = smov 64   ;;  %s776_s3 = smov 4  }
 0x131   : > { %611 = dma.vmem_to_hbm [thread:$0]  (%p832_p4), %s916_s6, 256, %s914_s15, %s922_s12, %s775_s30, %s775_s30, %s776_s3  }
 0x132 PF: > { %p617_p2 = scmp.ge.s32.totalorder %s770_s14, 2  ;;  %s497_s4 = sand.u32 1, %s750_s9  }
 0x133   : > { %s498_s5 = scalar_lea.sflag [#allocation4], %s497_s4 }
 0x134   : > { %p614_p3 = pnand %p617_p2, %p839_p8 }
 0x136   : > { %745 = dma.done.wait (!%p614_p3), %s498_s5, 256  }
 0x137   : > { %747 = vsyncadd (!%p614_p3), %s498_s5, 4294967040  ;;  %s15_s14 = sadd.s32 1, %s770_s14   ;;  %s973_s9 = smov %s754_s10 }
 0x138   : > { %p12_p5 = scmp.ge.s32.totalorder %s15_s14, 4   ;;  %s974_s10 = smov %s758_s11 }
 0x139   : > { %s975_s11 = smov %s845_s22  ;;  %s976_s12 = smov %s766_s13 }
 0x13a   : > { %s977_s13 = smov %s979_s17  ;;  %14 = sbr.rel (!%p12_p5) target bundleno = 4 (0x4), region = 67 }
 0x141   :  { %503 = vsyncpa [#allocation4], 1 }
 0x142   :  { %505 = vsyncpa [#allocation4 + $0x1], 1 }

</bundles_post_ra>
